<compile_context>
chip_gen: v5e
topology: v5e:2x2
jax: 0.10.0
libtpu: 0.0.40
codegen_flags: <defaults>
</compile_context>

<pallas_src>
import functools

import jax
import jax.numpy as jnp
from jax import lax
from jax.experimental import pallas as pl
from jax.experimental.pallas import tpu as pltpu

_NEG_SLOPE = 0.01  # nn.LeakyReLU() default negative_slope


def _leaky_relu(x):
    # max(x, a*x) == LeakyReLU(x) for 0 < a < 1; 2 VALU ops instead of 3.
    return jnp.maximum(x, _NEG_SLOPE * x)


def nn5_kernel(x_ref, w1_ref, b1_ref, w2_ref, b2_ref, w3_ref, b3_ref, o_ref):
    x = x_ref[...]                                                   # [TB, 5]  natural layout
    # Layer 1: h1^T = W1 @ x^T.  Expressed as an rhs-transposed dot_general
    # (the attention q@k^T pattern) so the MXU does the layout flip and the
    # batch dimension lands on the 128-lane axis (lane-dense intermediates).
    h1 = lax.dot_general(w1_ref[...], x, (((1,), (1,)), ((), ())),
                         preferred_element_type=jnp.float32)         # [32s, TB]
    h1 = _leaky_relu(h1 + b1_ref[...])
    h2 = jnp.dot(w2_ref[...], h1, preferred_element_type=jnp.float32)  # [16, TB]
    h2 = _leaky_relu(h2 + b2_ref[...])
    h3 = jnp.dot(w3_ref[...], h2, preferred_element_type=jnp.float32)  # [9, TB]
    h3 = h3 + b3_ref[...]
    # Single XLU transpose back to the natural [TB, 9] output layout.
    o_ref[...] = h3.T.astype(o_ref.dtype)


def _cdiv(a, b):
    return -(-a // b)


def _round_up(n, m):
    return _cdiv(n, m) * m


def _choose_tile(batch, block_b):
    """Batch tile: multiple of 128 lanes, >=2 (even) tiles when possible."""
    if batch <= 128:
        return 128
    n_tiles = max(_cdiv(batch, block_b), 2)   # >=2 so both v7x TCs get work
    if n_tiles % 2:
        n_tiles += 1                          # even tile count splits cleanly
    return _round_up(_cdiv(batch, n_tiles), 128)


@functools.partial(jax.jit, static_argnames=("block_b",))
def nn5_forward(x, params, block_b=8192):
    """x: [B, 5] float32 -> [B, 9] float32. params: PyTorch layout w[out,in], b[out]."""
    B, in_dim = x.shape
    w1, b1 = params["w1"], params["b1"]
    w2, b2 = params["w2"], params["b2"]
    w3, b3 = params["w3"], params["b3"]
    out_dim = w3.shape[0]

    tb = _choose_tile(B, block_b)
    grid = (_cdiv(B, tb),)                    # ragged last block is clipped by Pallas

    # Biases as [out, 1] so they broadcast over the lane (batch) axis in-kernel.
    b1c, b2c, b3c = b1.reshape(-1, 1), b2.reshape(-1, 1), b3.reshape(-1, 1)

    # Constant index_map => fetched once, VMEM-resident across the grid.
    resident = lambda a: pl.BlockSpec(a.shape, lambda i: (0, 0))

    flops = 2 * B * (w1.size + w2.size + w3.size)
    param_bytes = sum(4 * a.size for a in (w1, b1, w2, b2, w3, b3))
    bytes_accessed = 4 * B * (in_dim + out_dim) + param_bytes

    # Scoped-VMEM budget: double-buffered lane-padded I/O windows (~2 KiB/row)
    # + lane-dense f32 intermediates / transpose scratch (~1 KiB/row) + slack.
    vmem_limit = tb * 4608 + (8 << 20)

    out = pl.pallas_call(
        nn5_kernel,
        out_shape=jax.ShapeDtypeStruct((B, out_dim), jnp.float32),
        grid=grid,
        in_specs=[
            pl.BlockSpec((tb, in_dim), lambda i: (i, 0)),   # x: batch-tiled, natural layout
            resident(w1), resident(b1c),
            resident(w2), resident(b2c),
            resident(w3), resident(b3c),
        ],
        out_specs=pl.BlockSpec((tb, out_dim), lambda i: (i, 0)),
        compiler_params=pltpu.CompilerParams(
            dimension_semantics=("parallel",),
            vmem_limit_bytes=vmem_limit,
        ),
        cost_estimate=pl.CostEstimate(
            flops=flops, transcendentals=0, bytes_accessed=bytes_accessed),
    )(x, w1, b1c, w2, b2c, w3, b3c)
    return out


def init_params(key, scale=1, init_q=None):
    """Mimics nn.Linear init: uniform(-1/sqrt(fan_in), 1/sqrt(fan_in)).

    Weights stored in PyTorch layout [out, in] (what the kernel consumes).
    """
    dims = [(5, 32 * scale), (32 * scale, 16), (16, 9)]
    params = {}
    for i, (fan_in, fan_out) in enumerate(dims, start=1):
        key, kw, kb = jax.random.split(key, 3)
        bound = 1.0 / jnp.sqrt(fan_in)
        w = jax.random.uniform(kw, (fan_out, fan_in), jnp.float32, -bound, bound)
        b = jax.random.uniform(kb, (fan_out,), jnp.float32, -bound, bound)
        params[f"w{i}"] = w
        params[f"b{i}"] = b
    if init_q is not None:
        params["w3"] = jnp.zeros_like(params["w3"])
        params["b3"] = jnp.full_like(params["b3"], init_q)
    return params


def nn5_reference(x, params):
    h = _leaky_relu(x @ params["w1"].T + params["b1"])
    h = _leaky_relu(h @ params["w2"].T + params["b2"])
    return h @ params["w3"].T + params["b3"]


if __name__ == "__main__":
    key = jax.random.PRNGKey(0)
    kx, kx2, kp = jax.random.split(key, 3)

    params = init_params(kp, scale=1, init_q=None)

    # Small test: single ragged tile (B=8 rows inside a 128-row block).
    B, IN = 8, 5
    x = jax.random.normal(kx, (B, IN), jnp.float32)
    out = jax.block_until_ready(nn5_forward(x, params))
    ref = nn5_reference(x, params)
    assert out.shape == (B, 9), out.shape
    assert jnp.allclose(out, ref, atol=1e-4, rtol=1e-4), "mismatch vs reference (small)"

    # Multi-tile test: grid >= 2 (tb=256) with a ragged final block (300 = 256 + 44),
    # exercising resident weights across grid steps and clipped output writeback.
    B2 = 300
    x2 = jax.random.normal(kx2, (B2, IN), jnp.float32)
    out2 = jax.block_until_ready(nn5_forward(x2, params))
    ref2 = nn5_reference(x2, params)
    assert out2.shape == (B2, 9), out2.shape
    assert jnp.allclose(out2, ref2, atol=1e-4, rtol=1e-4), "mismatch vs reference (tiled)"

    print("KERNEL_OK")
</pallas_src>

<mosaic_0001>
module attributes {stable_mosaic.version = 11 : i64} {
  func.func @nn5_kernel(%arg0: i32, %arg1: memref<128x5xf32, #tpu.memory_space<vmem>>, %arg2: memref<32x5xf32, #tpu.memory_space<vmem>>, %arg3: memref<32x1xf32, #tpu.memory_space<vmem>>, %arg4: memref<16x32xf32, #tpu.memory_space<vmem>>, %arg5: memref<16x1xf32, #tpu.memory_space<vmem>>, %arg6: memref<9x16xf32, #tpu.memory_space<vmem>>, %arg7: memref<9x1xf32, #tpu.memory_space<vmem>>, %arg8: memref<128x9xf32, #tpu.memory_space<vmem>>) attributes {dimension_semantics = [#tpu.dimension_semantics<parallel>], iteration_bounds = array<i64: 1>, scalar_prefetch = 0 : i64, scratch_operands = 0 : i64, tpu.core_type = #tpu.core_type<tc>, window_params = [{transform_indices = @transform_0, window_bounds = array<i64: 128, 5>}, {pipeline_mode = #tpu.pipeline_mode<synchronous>, transform_indices = @transform_1, window_bounds = array<i64: 32, 5>}, {pipeline_mode = #tpu.pipeline_mode<synchronous>, transform_indices = @transform_2, window_bounds = array<i64: 32, 1>}, {pipeline_mode = #tpu.pipeline_mode<synchronous>, transform_indices = @transform_3, window_bounds = array<i64: 16, 32>}, {pipeline_mode = #tpu.pipeline_mode<synchronous>, transform_indices = @transform_4, window_bounds = array<i64: 16, 1>}, {pipeline_mode = #tpu.pipeline_mode<synchronous>, transform_indices = @transform_5, window_bounds = array<i64: 9, 16>}, {pipeline_mode = #tpu.pipeline_mode<synchronous>, transform_indices = @transform_6, window_bounds = array<i64: 9, 1>}, {transform_indices = @transform_7, window_bounds = array<i64: 128, 9>}]} {
    %c0 = arith.constant 0 : index
    %c0_0 = arith.constant 0 : index
    %0 = vector.load %arg1[%c0, %c0_0] : memref<128x5xf32, #tpu.memory_space<vmem>>, vector<128x5xf32>
    %c0_1 = arith.constant 0 : index
    %c0_2 = arith.constant 0 : index
    %1 = vector.load %arg2[%c0_1, %c0_2] : memref<32x5xf32, #tpu.memory_space<vmem>>, vector<32x5xf32>
    %cst = arith.constant dense<0.000000e+00> : vector<32x128xf32>
    %2 = tpu.matmul %1, %0, %cst {dimension_numbers = #tpu.dot_dimension_numbers<[1], [1], [0], [0], [0, 0, 1, 0], [], []>} : vector<32x5xf32>, vector<128x5xf32>, vector<32x128xf32> -> vector<32x128xf32>
    %c0_3 = arith.constant 0 : index
    %c0_4 = arith.constant 0 : index
    %3 = vector.load %arg3[%c0_3, %c0_4] : memref<32x1xf32, #tpu.memory_space<vmem>>, vector<32x1xf32>
    %4 = vector.broadcast %3 : vector<32x1xf32> to vector<32x128xf32>
    %5 = arith.addf %2, %4 : vector<32x128xf32>
    %cst_5 = arith.constant 0.00999999977 : f32
    %6 = vector.broadcast %cst_5 : f32 to vector<32x128xf32>
    %7 = arith.mulf %6, %5 : vector<32x128xf32>
    %8 = arith.maximumf %5, %7 : vector<32x128xf32>
    %c0_6 = arith.constant 0 : index
    %c0_7 = arith.constant 0 : index
    %9 = vector.load %arg4[%c0_6, %c0_7] : memref<16x32xf32, #tpu.memory_space<vmem>>, vector<16x32xf32>
    %cst_8 = arith.constant dense<0.000000e+00> : vector<16x128xf32>
    %10 = tpu.matmul %9, %8, %cst_8 {dimension_numbers = #tpu.dot_dimension_numbers<[1], [0], [0], [1], [0, 0, 1, 1], [], []>} : vector<16x32xf32>, vector<32x128xf32>, vector<16x128xf32> -> vector<16x128xf32>
    %c0_9 = arith.constant 0 : index
    %c0_10 = arith.constant 0 : index
    %11 = vector.load %arg5[%c0_9, %c0_10] : memref<16x1xf32, #tpu.memory_space<vmem>>, vector<16x1xf32>
    %12 = vector.broadcast %11 : vector<16x1xf32> to vector<16x128xf32>
    %13 = arith.addf %10, %12 : vector<16x128xf32>
    %cst_11 = arith.constant 0.00999999977 : f32
    %14 = vector.broadcast %cst_11 : f32 to vector<16x128xf32>
    %15 = arith.mulf %14, %13 : vector<16x128xf32>
    %16 = arith.maximumf %13, %15 : vector<16x128xf32>
    %c0_12 = arith.constant 0 : index
    %c0_13 = arith.constant 0 : index
    %17 = vector.load %arg6[%c0_12, %c0_13] : memref<9x16xf32, #tpu.memory_space<vmem>>, vector<9x16xf32>
    %cst_14 = arith.constant dense<0.000000e+00> : vector<9x128xf32>
    %18 = tpu.matmul %17, %16, %cst_14 {dimension_numbers = #tpu.dot_dimension_numbers<[1], [0], [0], [1], [0, 0, 1, 1], [], []>} : vector<9x16xf32>, vector<16x128xf32>, vector<9x128xf32> -> vector<9x128xf32>
    %c0_15 = arith.constant 0 : index
    %c0_16 = arith.constant 0 : index
    %19 = vector.load %arg7[%c0_15, %c0_16] : memref<9x1xf32, #tpu.memory_space<vmem>>, vector<9x1xf32>
    %20 = vector.broadcast %19 : vector<9x1xf32> to vector<9x128xf32>
    %21 = arith.addf %18, %20 : vector<9x128xf32>
    %22 = tpu.transpose %21, [1, 0] : vector<9x128xf32> -> vector<128x9xf32>
    %c0_17 = arith.constant 0 : index
    %c0_18 = arith.constant 0 : index
    %23 = vector.load %arg8[%c0_17, %c0_18] : memref<128x9xf32, #tpu.memory_space<vmem>>, vector<128x9xf32>
    tpu.vector_store %arg8[%c0_17, %c0_18], %22 {strides = array<i32>} : memref<128x9xf32, #tpu.memory_space<vmem>>, vector<128x9xf32>,
    return
  }
  func.func @transform_0(%arg0: i32) -> (i32, i32) {
    %c0_i32 = arith.constant 0 : i32
    %c0_i32_0 = arith.constant 0 : i32
    return %arg0, %c0_i32 : i32, i32
  }
  func.func @transform_1(%arg0: i32) -> (i32, i32) {
    %c0_i32 = arith.constant 0 : i32
    %c0_i32_0 = arith.constant 0 : i32
    %c0_i32_1 = arith.constant 0 : i32
    return %c0_i32, %c0_i32_0 : i32, i32
  }
  func.func @transform_2(%arg0: i32) -> (i32, i32) {
    %c0_i32 = arith.constant 0 : i32
    %c0_i32_0 = arith.constant 0 : i32
    %c0_i32_1 = arith.constant 0 : i32
    return %c0_i32, %c0_i32_0 : i32, i32
  }
  func.func @transform_3(%arg0: i32) -> (i32, i32) {
    %c0_i32 = arith.constant 0 : i32
    %c0_i32_0 = arith.constant 0 : i32
    %c0_i32_1 = arith.constant 0 : i32
    return %c0_i32, %c0_i32_0 : i32, i32
  }
  func.func @transform_4(%arg0: i32) -> (i32, i32) {
    %c0_i32 = arith.constant 0 : i32
    %c0_i32_0 = arith.constant 0 : i32
    %c0_i32_1 = arith.constant 0 : i32
    return %c0_i32, %c0_i32_0 : i32, i32
  }
  func.func @transform_5(%arg0: i32) -> (i32, i32) {
    %c0_i32 = arith.constant 0 : i32
    %c0_i32_0 = arith.constant 0 : i32
    %c0_i32_1 = arith.constant 0 : i32
    return %c0_i32, %c0_i32_0 : i32, i32
  }
  func.func @transform_6(%arg0: i32) -> (i32, i32) {
    %c0_i32 = arith.constant 0 : i32
    %c0_i32_0 = arith.constant 0 : i32
    %c0_i32_1 = arith.constant 0 : i32
    return %c0_i32, %c0_i32_0 : i32, i32
  }
  func.func @transform_7(%arg0: i32) -> (i32, i32) {
    %c0_i32 = arith.constant 0 : i32
    %c0_i32_0 = arith.constant 0 : i32
    return %arg0, %c0_i32 : i32, i32
  }
}

</mosaic_0001>

<bundles_post_ra>
// kernel: nn5_forward.1
= control target key start
LH: loop header
LB: loop body
LE: loop exit
PB: predicated region body
PF: predicated region fallthrough
CT: control target
= control target key end

     0   :  { %vm71_vm0 = vcmask 39936   ;;  %s597_s0 = inlined_call_operand.vmem [shape: f32[8,5], index: 0, kind: input, shape index: {}]   ;;  %s598_s1 = inlined_call_operand.vmem [shape: f32[32,5], index: 1, kind: input, shape index: {}]   ;;  %s599_s2 = inlined_call_operand.vmem [shape: f32[32,1], index: 2, kind: input, shape index: {}]   ;;  %s600_s3 = inlined_call_operand.vmem [shape: f32[16,32], index: 3, kind: input, shape index: {}]   ;;  %s601_s4 = inlined_call_operand.vmem [shape: f32[16,1], index: 4, kind: input, shape index: {}]   ;;  %s602_s5 = inlined_call_operand.vmem [shape: f32[9,16], index: 5, kind: input, shape index: {}]   ;;  %s603_s6 = inlined_call_operand.vmem [shape: f32[9,1], index: 6, kind: input, shape index: {}]   ;;  %s604_s7 = inlined_call_operand.hbm [shape: f32[8,9], index: 7, kind: output, shape index: {}]  }
   0x1   :  { %v42_v0 = vld [vmem:[%s597_s0 + $0x78] sm:$0xff] }
   0x2   :  { %352 = vmatpush.xpose.msk.msra.mxu3 %vm71_vm0, %v42_v0 }
   0x3   :  { %12 = vsyncpa [#allocation3], 0  ;;  %328 = vmatpush.xpose.msk.msra.mxu0 %vm71_vm0, %v42_v0  ;;  %v41_v1 = vld [vmem:[%s597_s0 + $0x70] sm:$0xff]  ;;  %v40_v2 = vld [vmem:[%s597_s0 + $0x68] sm:$0xff]  ;;  %v402_v14 = vmov 0   ;;  %vm183_vm1 = vcmask 261120  }
   0x4   :  { %v39_v3 = vld [vmem:[%s597_s0 + $0x60] sm:$0xff]  ;;  %v38_v4 = vld [vmem:[%s597_s0 + $0x58] sm:$0xff]  ;;  %v37_v5 = vld [vmem:[%s597_s0 + $0x50] sm:$0xff]  ;;  %373 = vset.pattern.permute.xlu0 %v402_v14  ;;  %374 = vset.pattern.permute.xlu1 %v402_v14  ;;  %vm231_vm2 = vcmask 130048   ;;  %vm293_vm3 = vcmask 72704  }
   0x5   :  { %v36_v6 = vld [vmem:[%s597_s0 + $0x48] sm:$0xff]  ;;  %v35_v7 = vld [vmem:[%s597_s0 + $0x40] sm:$0xff]  ;;  %v34_v8 = vld [vmem:[%s597_s0 + $0x38] sm:$0xff]  ;;  %375 = vset.pattern.permute.xlu2 %v402_v14 }
   0x6   :  { %353 = vmatpush.xpose.msk.msra.mxu3 %vm71_vm0, %v41_v1  ;;  %v33_v9 = vld [vmem:[%s597_s0 + $0x30] sm:$0xff]  ;;  %v32_v10 = vld [vmem:[%s597_s0 + $0x28] sm:$0xff]  ;;  %v50_v11 = vld [vmem:[%s599_s2 + $0x18] sm:$0xff] }
   0x7   :  { %329 = vmatpush.xpose.msk.msra.mxu0 %vm71_vm0, %v41_v1  ;;  %v48_v12 = vld [vmem:[%s599_s2 + $0x8] sm:$0xff]  ;;  %v31_v13 = vld [vmem:[%s597_s0 + $0x20] sm:$0xff]  ;;  %68 = vperm.xlu0 %373, %v50_v11   ;;  %v30_v15 = vld [vmem:[%s597_s0 + $0x18] sm:$0xff] }
   0x8   :  { %58 = vperm.xlu1 %374, %v48_v12   ;;  %v49_v16 = vld [vmem:[%s599_s2 + $0x10] sm:$0xff]  ;;  %v47_v17 = vld [vmem:[%s599_s2] sm:$0xff]  ;;  %v28_v19 = vld [vmem:[%s597_s0 + $0x8] sm:$0xff] }
   0x9   :  { %v29_v18 = vld [vmem:[%s597_s0 + $0x10] sm:$0xff]  ;;  %v219_v20 = vld [vmem:[%s603_s6] sm:$0xff]  ;;  %v220_v21 = vld [vmem:[%s603_s6 + $0x8] sm:$0x1] }
   0xa   :  { %354 = vmatpush.xpose.msk.msra.mxu3 %vm71_vm0, %v40_v2  ;;  %v27_v22 = vld [vmem:[%s597_s0] sm:$0xff]  ;;  %v44_v23 = vld [vmem:[%s598_s1 + $0x8] sm:$0xff]  ;;  %v45_v25 = vld [vmem:[%s598_s1 + $0x10] sm:$0xff] }
   0xb   :  { %330 = vmatpush.xpose.msk.msra.mxu0 %vm71_vm0, %v40_v2  ;;  %v43_v24 = vld [vmem:[%s598_s1] sm:$0xff]  ;;  %v46_v26 = vld [vmem:[%s598_s1 + $0x18] sm:$0xff]  ;;  %v172_v29 = vld [vmem:[%s601_s4 + $0x8] sm:$0xff] }
   0xc   :  { %180 = vperm.xlu2 %375, %v172_v29   ;;  %v171_v32 = vld [vmem:[%s601_s4] sm:$0xff]  ;;  %v170_v50 = vld [vmem:[%s600_s3 + $0x8] sm:$0xff] }
   0xd   :  { %v169_v49 = vld [vmem:[%s600_s3] sm:$0xff]  ;;  %v218_v62 = vld [vmem:[%s602_s5 + $0x8] sm:$0x1] }
   0xe   :  { %355 = vmatpush.xpose.msk.msra.mxu3 %vm71_vm0, %v39_v3  ;;  %v217_v61 = vld [vmem:[%s602_s5] sm:$0xff] }
   0xf   :  { %331 = vmatpush.xpose.msk.msra.mxu0 %vm71_vm0, %v39_v3  ;;  %63 = vperm.xlu0 %373, %v49_v16  }
  0x10   :  { %53 = vperm.xlu1 %374, %v47_v17  }
  0x12   :  { %356 = vmatpush.xpose.msk.msra.mxu3 %vm71_vm0, %v38_v4 }
  0x13   :  { %332 = vmatpush.xpose.msk.msra.mxu0 %vm71_vm0, %v38_v4 }
  0x14   :  { %175 = vperm.xlu2 %375, %v171_v32  }
  0x16   :  { %357 = vmatpush.xpose.msk.msra.mxu3 %vm71_vm0, %v37_v5 }
  0x17   :  { %333 = vmatpush.xpose.msk.msra.mxu0 %vm71_vm0, %v37_v5  ;;  %223 = vperm.xlu0 %373, %v219_v20  }
  0x18   :  { %228 = vperm.xlu1 %374, %v220_v21  }
  0x1a   :  { %358 = vmatpush.xpose.msk.msra.mxu3 %vm71_vm0, %v36_v6 }
  0x1b   :  { %334 = vmatpush.xpose.msk.msra.mxu0 %vm71_vm0, %v36_v6 }
  0x1e   :  { %359 = vmatpush.xpose.msk.msra.mxu3 %vm71_vm0, %v35_v7 }
  0x1f   :  { %335 = vmatpush.xpose.msk.msra.mxu0 %vm71_vm0, %v35_v7 }
  0x22   :  { %360 = vmatpush.xpose.msk.msra.mxu3 %vm71_vm0, %v34_v8 }
  0x23   :  { %336 = vmatpush.xpose.msk.msra.mxu0 %vm71_vm0, %v34_v8 }
  0x26   :  { %361 = vmatpush.xpose.msk.msra.mxu3 %vm71_vm0, %v33_v9 }
  0x27   :  { %337 = vmatpush.xpose.msk.msra.mxu0 %vm71_vm0, %v33_v9 }
  0x2a   :  { %362 = vmatpush.xpose.msk.msra.mxu3 %vm71_vm0, %v32_v10 }
  0x2b   :  { %338 = vmatpush.xpose.msk.msra.mxu0 %vm71_vm0, %v32_v10 }
  0x2e   :  { %363 = vmatpush.xpose.msk.msra.mxu3 %vm71_vm0, %v31_v13 }
  0x2f   :  { %339 = vmatpush.xpose.msk.msra.mxu0 %vm71_vm0, %v31_v13 }
  0x32   :  { %364 = vmatpush.xpose.msk.msra.mxu3 %vm71_vm0, %v30_v15 }
  0x33   :  { %340 = vmatpush.xpose.msk.msra.mxu0 %vm71_vm0, %v30_v15 }
  0x36   :  { %365 = vmatpush.xpose.msk.msra.mxu3 %vm71_vm0, %v29_v18 }
  0x37   :  { %341 = vmatpush.xpose.msk.msra.mxu0 %vm71_vm0, %v29_v18 }
  0x3a   :  { %366 = vmatpush.xpose.msk.msra.mxu3 %vm71_vm0, %v28_v19 }
  0x3b   :  { %342 = vmatpush.xpose.msk.msra.mxu0 %vm71_vm0, %v28_v19 }
  0x3e   :  { %367 = vmatpush.xpose.msk.msra.mxu3 %vm71_vm0, %v27_v22 }
  0x3f   :  { %343 = vmatpush.xpose.msk.msra.mxu0 %vm71_vm0, %v27_v22 }
  0x41   :  { %345 = vmatmul.msk.f32.vlgmr.msra.gmra.mxu3 %vm71_vm0, %v44_v23 }
  0x42   :  { %344 = vmatmul.msk.f32.vlgmr.msra.gmra.mxu0 %vm71_vm0, %v43_v24 }
  0x49   :  { %346 = vmatmul.msk.f32.gmra.mxu3 %vm71_vm0, %v45_v25 }
  0x51   :  { %347 = vmatmul.msk.f32.gmra.mxu3 %vm71_vm0, %v46_v26 }
  0x66   :  { %v181_v51 = vpop.permute.xlu2 %180 }
  0x6e   :  { %v176_v53 = vpop.permute.xlu2 %175 }
  0x79   :  { %v69_v28 = vpop.permute.xlu0 %68 }
  0x7a   :  { %v59_v30 = vpop.permute.xlu1 %58 }
  0x81   :  { %v64_v33 = vpop.permute.xlu0 %63 }
  0x82   :  { %v54_v39 = vpop.permute.xlu1 %53 }
  0x89   :  { %v224_v63 = vpop.permute.xlu0 %223 }
  0x8a   :  { %v229_v2 = vpop.permute.xlu1 %228 }
  0xbf   :  { %v149_v35 = vpop.f32.mrf.mxu0 }
  0xc0   :  { %v150_v41 = vadd.f32 %v149_v35, %v54_v39 }
  0xc2   :  { %v161_v45 = vmul.f32 0.01, %v150_v41 }
  0xc4   :  { %v152_v27 = vpop.f32.mrf.mxu3  ;;  %v165_v48 = vmax.f32 %v150_v41, %v161_v45 }
  0xc5   :  { %v153_v37 = vadd.f32 %v152_v27, %v59_v30 }
  0xc7   :  { %v162_v43 = vmul.f32 0.01, %v153_v37 }
  0xc9   :  { %v166_v47 = vmax.f32 %v153_v37, %v162_v43 }
  0xcc   :  { %v155_v31 = vpop.f32.mrf.mxu3 }
  0xcd   :  { %v156_v34 = vadd.f32 %v155_v31, %v64_v33 }
  0xcf   :  { %v163_v40 = vmul.f32 0.01, %v156_v34 }
  0xd1   :  { %v167_v46 = vmax.f32 %v156_v34, %v163_v40 }
  0xd4   :  { %v158_v36 = vpop.f32.mrf.mxu3 }
  0xd5   :  { %v159_v38 = vadd.f32 %v158_v36, %v69_v28 }
  0xd7   :  { %v164_v42 = vmul.f32 0.01, %v159_v38 }
  0xd9   :  { %v168_v44 = vmax.f32 %v159_v38, %v164_v42 }
  0xdb   :  { %202 = vmatpush.msra.mxu1 %v168_v44 }
  0xdd   :  { %203 = vmatpush.msra.mxu1 %v167_v46 }
  0xdf   :  { %204 = vmatpush.msra.mxu1 %v166_v47 }
  0xe1   :  { %205 = vmatpush.msra.mxu1 %v165_v48 }
  0xe2   :  { %348 = vmatmul.msk.f32.vlgmr.msra.gmra.mxu1 %vm183_vm1, %v169_v49 }
  0xea   :  { %349 = vmatmul.msk.f32.gmra.mxu1 %vm183_vm1, %v170_v50 }
 0x15f   :  { %v207_v52 = vpop.f32.mrf.mxu1 }
 0x160   :  { %v208_v54 = vadd.f32 %v207_v52, %v176_v53 }
 0x162   :  { %v213_v57 = vmul.f32 0.01, %v208_v54 }
 0x164   :  { %v215_v60 = vmax.f32 %v208_v54, %v213_v57 }
 0x167   :  { %v210_v55 = vpop.f32.mrf.mxu1 }
 0x168   :  { %v211_v56 = vadd.f32 %v210_v55, %v181_v51 }
 0x16a   :  { %v214_v58 = vmul.f32 0.01, %v211_v56 }
 0x16c   :  { %v216_v59 = vmax.f32 %v211_v56, %v214_v58 }
 0x16e   :  { %252 = vmatpush.msra.mxu2 %v216_v59 }
 0x170   :  { %253 = vmatpush.msra.mxu2 %v215_v60 }
 0x171   :  { %350 = vmatmul.msk.f32.vlgmr.msra.gmra.mxu2 %vm231_vm2, %v217_v61 }
 0x179   :  { %351 = vmatmul.msk.f32.gmra.mxu2 %vm231_vm2, %v218_v62 }
 0x1f4   :  { %v255_v0 = vpop.f32.mrf.mxu2 }
 0x1f5   :  { %v256_v1 = vadd.f32 %v255_v0, %v224_v63 }
 0x1f7   :  { %261 = vxpose.xlu2.b32.start [1/2] (short) %v256_v1, 128 }
 0x1fc   :  { %v258_v3 = vpop.f32.mrf.mxu2 }
 0x1fd   :  { %v259_v4 = vadd.f32 %v258_v3, %v229_v2 }
 0x1ff   :  { %262 = vxpose.xlu2.b32.end [2/2] (short) %v259_v4, 128 }
 0x290   :  { %v277_v5 = vpop.trf.xlu2 }
 0x291   :  { %294 = vst.msk [vmem:[#allocation2] sm:$0xff] %vm293_vm3, %v277_v5 }
 0x298   :  { %v278_v6 = vpop.trf.xlu2 }
 0x299   :  { %295 = vst.msk [vmem:[#allocation2 + $0x8] sm:$0xff] %vm293_vm3, %v278_v6 }
 0x2a0   :  { %v279_v7 = vpop.trf.xlu2 }
 0x2a1   :  { %296 = vst.msk [vmem:[#allocation2 + $0x10] sm:$0xff] %vm293_vm3, %v279_v7 }
 0x2a8   :  { %v280_v8 = vpop.trf.xlu2 }
 0x2a9   :  { %297 = vst.msk [vmem:[#allocation2 + $0x18] sm:$0xff] %vm293_vm3, %v280_v8 }
 0x2b0   :  { %v281_v9 = vpop.trf.xlu2 }
 0x2b1   :  { %298 = vst.msk [vmem:[#allocation2 + $0x20] sm:$0xff] %vm293_vm3, %v281_v9 }
 0x2b8   :  { %v282_v10 = vpop.trf.xlu2 }
 0x2b9   :  { %299 = vst.msk [vmem:[#allocation2 + $0x28] sm:$0xff] %vm293_vm3, %v282_v10 }
 0x2c0   :  { %v283_v11 = vpop.trf.xlu2 }
 0x2c1   :  { %300 = vst.msk [vmem:[#allocation2 + $0x30] sm:$0xff] %vm293_vm3, %v283_v11 }
 0x2c8   :  { %v284_v12 = vpop.trf.xlu2 }
 0x2c9   :  { %301 = vst.msk [vmem:[#allocation2 + $0x38] sm:$0xff] %vm293_vm3, %v284_v12 }
 0x2d0   :  { %v285_v13 = vpop.trf.xlu2 }
 0x2d1   :  { %302 = vst.msk [vmem:[#allocation2 + $0x40] sm:$0xff] %vm293_vm3, %v285_v13 }
 0x2d8   :  { %v286_v14 = vpop.trf.xlu2 }
 0x2d9   :  { %303 = vst.msk [vmem:[#allocation2 + $0x48] sm:$0xff] %vm293_vm3, %v286_v14 }
 0x2e0   :  { %v287_v15 = vpop.trf.xlu2 }
 0x2e1   :  { %304 = vst.msk [vmem:[#allocation2 + $0x50] sm:$0xff] %vm293_vm3, %v287_v15 }
 0x2e8   :  { %v288_v16 = vpop.trf.xlu2 }
 0x2e9   :  { %305 = vst.msk [vmem:[#allocation2 + $0x58] sm:$0xff] %vm293_vm3, %v288_v16 }
 0x2f0   :  { %v289_v17 = vpop.trf.xlu2 }
 0x2f1   :  { %306 = vst.msk [vmem:[#allocation2 + $0x60] sm:$0xff] %vm293_vm3, %v289_v17 }
 0x2f8   :  { %v290_v18 = vpop.trf.xlu2 }
 0x2f9   :  { %307 = vst.msk [vmem:[#allocation2 + $0x68] sm:$0xff] %vm293_vm3, %v290_v18 }
 0x300   :  { %v291_v19 = vpop.trf.xlu2 }
 0x301   :  { %308 = vst.msk [vmem:[#allocation2 + $0x70] sm:$0xff] %vm293_vm3, %v291_v19 }
 0x308   :  { %v292_v20 = vpop.trf.xlu2 }
 0x309   :  { %309 = vst.msk [vmem:[#allocation2 + $0x78] sm:$0xff] %vm293_vm3, %v292_v20 }
 0x30a   :  { %313 = vsyncadd [#allocation3], 1920  ;;  %s316_s14 = sshll.u32 %s604_s7, 4  ;;  %s403_s15 = smov [#allocation2]   ;;  %s317_s14 = int_to_ptr.hbm [resolvable:$true] %s316_s14 }
 0x30b   :  { %s314_s16 = sshll.u32 %s403_s15, 4  ;;  %s404_s2 = smov 128   ;;  %s315_s16 = int_to_ptr.vmem [resolvable:$true] %s314_s16 }
 0x30c   :  { %s405_s17 = smov 8  }
 0x30d   :  { %322 = dma.vmem_to_hbm [thread:$0]  %s315_s16, 128, %s317_s14, [#allocation3], %s404_s2, %s404_s2, %s405_s17  }
 0x30e   :  { %400 = dma.done.wait [#allocation3], 2048  }
 0x30f   :  { %401 = vsyncadd [#allocation3], 4294965248 }
 0x310   :  { %327 = vsyncpa [#allocation3], 1 }

</bundles_post_ra>
